<compile_context>
chip_gen: v7x
topology: tpu7x:2x2x1
jax: 0.10.0
libtpu: 0.0.40
codegen_flags: <defaults>
</compile_context>

<pallas_src>
import jax
import jax.numpy as jnp
from jax.experimental import pallas as pl
from jax.experimental.pallas import tpu as pltpu


def _mha_block_kernel(xt_ref, w1_ref, b1_ref, w2_ref, b2_ref, fcw_ref, fcb_ref, ot_ref):
    cdt = w1_ref.dtype                        # matmul-operand / elementwise compute dtype
    xt = xt_ref[...].astype(cdt)              # (F, tb); no-op (wrapper already casts)
    # Layer 1: (H*F/2, F) @ (F, tb) -> (H*F/2, tb); fp32 accumulate, bias + ReLU in fp32.
    h1 = jnp.dot(w1_ref[...], xt, preferred_element_type=jnp.float32)
    h1 = jnp.maximum(h1 + b1_ref[...], 0.0)
    # Layer 2 (block-diagonal): (H*F, H*F/2) @ (H*F/2, tb) -> (H*F, tb).
    a = jnp.dot(w2_ref[...], h1.astype(cdt), preferred_element_type=jnp.float32)
    # Bias + sigmoid in the compute dtype (bf16 on v6e/v7x); result feeds the MXU directly.
    a = jax.nn.sigmoid(a.astype(b2_ref.dtype) + b2_ref[...])
    # fc over the (virtual) concat: (F, H*F) @ (H*F, tb) -> (F, tb).
    out = jnp.dot(fcw_ref[...], a.astype(cdt), preferred_element_type=jnp.float32)
    ot_ref[...] = (out + fcb_ref[...]).astype(ot_ref.dtype)


def _pick_batch_tile(batch):
    # Batch lives on the 128-lane axis: tiles must be a multiple of 128 (or the full batch).
    # Target ~4 grid steps (>=2 so v7x's two TensorCores both get work and DMA overlaps
    # compute), never more than 8192 rows per step (VMEM headroom on every generation).
    if batch <= 128:
        return batch                                   # single step; too small to split
    tile = ((pl.cdiv(batch, 4) + 127) // 128) * 128    # lane-aligned
    return max(128, min(tile, 8192))


def multi_head_attention_block(x, packed_params, *, out_dtype=None):
    """x: (B, F). packed_params: output of pack_params(). Returns (B, F)."""
    w1t, b1t, w2t, b2t, fcwt, fcbt = packed_params
    B, F = x.shape
    HD = w1t.shape[0]          # H * F // 2
    HF = w2t.shape[0]          # H * F
    out_dtype = x.dtype if out_dtype is None else out_dtype

    # Lane-dense transposed layout; casting here makes the first matmul a native
    # compute-dtype (e.g. bf16) matmul and halves x's streamed bytes in the bf16 path.
    xt = x.T.astype(w1t.dtype)                 # (F, B)

    tb = _pick_batch_tile(B)
    grid = (pl.cdiv(B, tb),)

    const = lambda arr: pl.BlockSpec(arr.shape, lambda i: (0, 0))   # VMEM-resident weights

    flops = 2 * B * (F * HD + HD * HF + HF * F)
    bytes_accessed = (int(xt.size) * xt.dtype.itemsize
                      + sum(int(a.size) * a.dtype.itemsize for a in packed_params)
                      + B * F * jnp.dtype(out_dtype).itemsize)
    cost = pl.CostEstimate(flops=flops, transcendentals=B * HF,
                           bytes_accessed=bytes_accessed)

    out_t = pl.pallas_call(
        _mha_block_kernel,
        out_shape=jax.ShapeDtypeStruct((F, B), out_dtype),
        grid=grid,
        in_specs=[
            pl.BlockSpec((F, tb), lambda i: (0, i)),   # x^T: pipelined over batch (lane axis)
            const(w1t), const(b1t),
            const(w2t), const(b2t),
            const(fcwt), const(fcbt),
        ],
        out_specs=pl.BlockSpec((F, tb), lambda i: (0, i)),
        compiler_params=pltpu.CompilerParams(
            dimension_semantics=("parallel",),          # megacore sharding on v7x
            vmem_limit_bytes=32 * 1024 * 1024),         # clears v5e's 16 MiB default at big tiles
        cost_estimate=cost,
    )(xt, w1t, b1t, w2t, b2t, fcwt, fcbt)

    return out_t.T                                      # (B, F), matches the PyTorch output


def init_params(key, in_features, num_heads, dtype=jnp.float32):
    """Deterministic synthetic per-head parameters matching the PyTorch module's shapes."""
    hidden = in_features // 2
    ks = jax.random.split(key, 6)
    # Per-head Linear(F, F//2): torch weight (F//2, F); stored transposed (in, out).
    w1 = jax.random.normal(ks[0], (num_heads, in_features, hidden), dtype) * 0.1
    b1 = jax.random.normal(ks[1], (num_heads, 1, hidden), dtype) * 0.1
    # Per-head Linear(F//2, F): torch weight (F, F//2); stored transposed.
    w2 = jax.random.normal(ks[2], (num_heads, hidden, in_features), dtype) * 0.1
    b2 = jax.random.normal(ks[3], (num_heads, 1, in_features), dtype) * 0.1
    # fc: Linear(F*H, F): torch weight (F, F*H); stored transposed (F*H, F), split per head.
    fcw_t = jax.random.normal(ks[4], (in_features * num_heads, in_features), dtype) * 0.1
    fcw = fcw_t.reshape(num_heads, in_features, in_features)
    fcb = jax.random.normal(ks[5], (1, in_features), dtype) * 0.1
    return (w1, b1, w2, b2, fcw, fcb)


def pack_params(params, compute_dtype=jnp.float32):
    """Host-side, one-time repacking into the transposed lane-dense operands.

    compute_dtype is the matmul-operand / sigmoid dtype: use jnp.bfloat16 on v6e/v7x
    (native bf16 MXU + VPU/EUP), keep jnp.float32 on v5e. Layer-1/fc bias adds stay fp32.
    """
    w1, b1, w2, b2, fcw, fcb = params
    H, F, HD = w1.shape
    # Layer 1, transposed & stacked along rows -> (H*HD, F); row-block h == w1[h].T.
    w1t = jnp.transpose(w1, (0, 2, 1)).reshape(H * HD, F)
    b1t = b1.reshape(H * HD, 1)
    # Layer 2, transposed exact block-diagonal -> (H*F, H*HD); block h == w2[h].T.
    w2t = jnp.zeros((H * F, H * HD), w2.dtype)
    for h in range(H):
        w2t = w2t.at[h * F:(h + 1) * F, h * HD:(h + 1) * HD].set(w2[h].T)
    b2t = b2.reshape(H * F, 1)
    # fc, transposed -> (F, H*F); the concat is realized by the flat K = H*F contraction.
    fcwt = fcw.reshape(H * F, F).T
    fcbt = fcb.reshape(F, 1)
    return (w1t.astype(compute_dtype), b1t.astype(jnp.float32),
            w2t.astype(compute_dtype), b2t.astype(compute_dtype),
            fcwt.astype(compute_dtype), fcbt.astype(jnp.float32))


def reference_forward(x, params):
    """Pure-JAX per-head reference mirroring the PyTorch forward."""
    w1, b1, w2, b2, fcw, fcb = params
    H = w1.shape[0]
    heads = []
    for h in range(H):
        h1 = jnp.maximum(x @ w1[h] + b1[h], 0.0)
        heads.append(jax.nn.sigmoid(h1 @ w2[h] + b2[h]))
    cat = jnp.concatenate(heads, axis=-1)                      # (B, F*H)
    fcw_full = fcw.reshape(-1, fcw.shape[-1])                  # (F*H, F)
    return cat @ fcw_full + fcb


def packed_reference(x, packed):
    """fp32 reference using the (possibly quantized) packed operands — isolates in-kernel rounding."""
    w1t, b1t, w2t, b2t, fcwt, fcbt = [p.astype(jnp.float32) for p in packed]
    h1 = jnp.maximum(w1t @ x.T + b1t, 0.0)
    a = jax.nn.sigmoid(w2t @ h1 + b2t)
    return (fcwt @ a + fcbt).T


if __name__ == "__main__":
    in_features = 32
    num_heads = 4

    key = jax.random.PRNGKey(0)
    kx, kp, kx2 = jax.random.split(key, 3)
    params = init_params(kp, in_features, num_heads)

    # --- Test 1: tiny fp32 path, checked against the per-head reference -------------------
    batch = 8
    x = jax.random.normal(kx, (batch, in_features), jnp.float32)
    packed_f32 = pack_params(params, compute_dtype=jnp.float32)
    out = jax.block_until_ready(multi_head_attention_block(x, packed_f32))
    ref = reference_forward(x, params)
    assert out.shape == (batch, in_features)
    assert jnp.allclose(out, ref, atol=1e-4, rtol=1e-4), "fp32 mismatch vs per-head reference"

    # --- Test 2: bf16 compute + bf16 output + ragged batch (padded last lane block) -------
    batch2 = 1030
    x2 = jax.random.normal(kx2, (batch2, in_features), jnp.float32)
    packed_bf16 = pack_params(params, compute_dtype=jnp.bfloat16)
    out2 = jax.block_until_ready(
        multi_head_attention_block(x2, packed_bf16, out_dtype=jnp.bfloat16))
    ref2 = packed_reference(x2, packed_bf16)       # same bf16-quantized weights, fp32 math
    assert out2.shape == (batch2, in_features)
    assert jnp.allclose(out2.astype(jnp.float32), ref2, atol=5e-2, rtol=5e-2), \
        "bf16 mismatch vs packed reference"

    print("KERNEL_OK")
</pallas_src>

<mosaic_0001>
module attributes {stable_mosaic.version = 11 : i64} {
  func.func @_mha_block_kernel(%arg0: i32, %arg1: memref<32x8xf32, #tpu.memory_space<vmem>>, %arg2: memref<64x32xf32, #tpu.memory_space<vmem>>, %arg3: memref<64x1xf32, #tpu.memory_space<vmem>>, %arg4: memref<128x64xf32, #tpu.memory_space<vmem>>, %arg5: memref<128x1xf32, #tpu.memory_space<vmem>>, %arg6: memref<32x128xf32, #tpu.memory_space<vmem>>, %arg7: memref<32x1xf32, #tpu.memory_space<vmem>>, %arg8: memref<32x8xf32, #tpu.memory_space<vmem>>) attributes {dimension_semantics = [#tpu.dimension_semantics<parallel>], iteration_bounds = array<i64: 1>, scalar_prefetch = 0 : i64, scratch_operands = 0 : i64, tpu.core_type = #tpu.core_type<tc>, window_params = [{transform_indices = @transform_0, window_bounds = array<i64: 32, 8>}, {pipeline_mode = #tpu.pipeline_mode<synchronous>, transform_indices = @transform_1, window_bounds = array<i64: 64, 32>}, {pipeline_mode = #tpu.pipeline_mode<synchronous>, transform_indices = @transform_2, window_bounds = array<i64: 64, 1>}, {pipeline_mode = #tpu.pipeline_mode<synchronous>, transform_indices = @transform_3, window_bounds = array<i64: 128, 64>}, {pipeline_mode = #tpu.pipeline_mode<synchronous>, transform_indices = @transform_4, window_bounds = array<i64: 128, 1>}, {pipeline_mode = #tpu.pipeline_mode<synchronous>, transform_indices = @transform_5, window_bounds = array<i64: 32, 128>}, {pipeline_mode = #tpu.pipeline_mode<synchronous>, transform_indices = @transform_6, window_bounds = array<i64: 32, 1>}, {transform_indices = @transform_7, window_bounds = array<i64: 32, 8>}]} {
    %c0 = arith.constant 0 : index
    %c0_0 = arith.constant 0 : index
    %0 = vector.load %arg1[%c0, %c0_0] : memref<32x8xf32, #tpu.memory_space<vmem>>, vector<32x8xf32>
    %c0_1 = arith.constant 0 : index
    %c0_2 = arith.constant 0 : index
    %1 = vector.load %arg2[%c0_1, %c0_2] : memref<64x32xf32, #tpu.memory_space<vmem>>, vector<64x32xf32>
    %cst = arith.constant dense<0.000000e+00> : vector<64x8xf32>
    %2 = tpu.matmul %1, %0, %cst {dimension_numbers = #tpu.dot_dimension_numbers<[1], [0], [0], [1], [0, 0, 1, 1], [], []>} : vector<64x32xf32>, vector<32x8xf32>, vector<64x8xf32> -> vector<64x8xf32>
    %c0_3 = arith.constant 0 : index
    %c0_4 = arith.constant 0 : index
    %3 = vector.load %arg3[%c0_3, %c0_4] : memref<64x1xf32, #tpu.memory_space<vmem>>, vector<64x1xf32>
    %4 = vector.broadcast %3 : vector<64x1xf32> to vector<64x8xf32>
    %5 = arith.addf %2, %4 : vector<64x8xf32>
    %cst_5 = arith.constant 0.000000e+00 : f32
    %6 = vector.broadcast %cst_5 : f32 to vector<64x8xf32>
    %7 = arith.maximumf %5, %6 : vector<64x8xf32>
    %c0_6 = arith.constant 0 : index
    %c0_7 = arith.constant 0 : index
    %8 = vector.load %arg4[%c0_6, %c0_7] : memref<128x64xf32, #tpu.memory_space<vmem>>, vector<128x64xf32>
    %cst_8 = arith.constant dense<0.000000e+00> : vector<128x8xf32>
    %9 = tpu.matmul %8, %7, %cst_8 {dimension_numbers = #tpu.dot_dimension_numbers<[1], [0], [0], [1], [0, 0, 1, 1], [], []>} : vector<128x64xf32>, vector<64x8xf32>, vector<128x8xf32> -> vector<128x8xf32>
    %c0_9 = arith.constant 0 : index
    %c0_10 = arith.constant 0 : index
    %10 = vector.load %arg5[%c0_9, %c0_10] : memref<128x1xf32, #tpu.memory_space<vmem>>, vector<128x1xf32>
    %11 = vector.broadcast %10 : vector<128x1xf32> to vector<128x8xf32>
    %12 = arith.addf %9, %11 : vector<128x8xf32>
    %13 = arith.negf %12 : vector<128x8xf32>
    %14 = math.exp %13 : vector<128x8xf32>
    %cst_11 = arith.constant 1.000000e+00 : f32
    %15 = vector.broadcast %cst_11 : f32 to vector<128x8xf32>
    %16 = arith.addf %15, %14 : vector<128x8xf32>
    %17 = arith.divf %15, %16 : vector<128x8xf32>
    %c0_12 = arith.constant 0 : index
    %c0_13 = arith.constant 0 : index
    %18 = vector.load %arg6[%c0_12, %c0_13] : memref<32x128xf32, #tpu.memory_space<vmem>>, vector<32x128xf32>
    %cst_14 = arith.constant dense<0.000000e+00> : vector<32x8xf32>
    %19 = tpu.matmul %18, %17, %cst_14 {dimension_numbers = #tpu.dot_dimension_numbers<[1], [0], [0], [1], [0, 0, 1, 1], [], []>} : vector<32x128xf32>, vector<128x8xf32>, vector<32x8xf32> -> vector<32x8xf32>
    %c0_15 = arith.constant 0 : index
    %c0_16 = arith.constant 0 : index
    %20 = vector.load %arg7[%c0_15, %c0_16] : memref<32x1xf32, #tpu.memory_space<vmem>>, vector<32x1xf32>
    %21 = vector.broadcast %20 : vector<32x1xf32> to vector<32x8xf32>
    %22 = arith.addf %19, %21 : vector<32x8xf32>
    %c0_17 = arith.constant 0 : index
    %c0_18 = arith.constant 0 : index
    %23 = vector.load %arg8[%c0_17, %c0_18] : memref<32x8xf32, #tpu.memory_space<vmem>>, vector<32x8xf32>
    tpu.vector_store %arg8[%c0_17, %c0_18], %22 {strides = array<i32>} : memref<32x8xf32, #tpu.memory_space<vmem>>, vector<32x8xf32>,
    return
  }
  func.func @transform_0(%arg0: i32) -> (i32, i32) {
    %c0_i32 = arith.constant 0 : i32
    %c0_i32_0 = arith.constant 0 : i32
    return %c0_i32, %arg0 : i32, i32
  }
  func.func @transform_1(%arg0: i32) -> (i32, i32) {
    %c0_i32 = arith.constant 0 : i32
    %c0_i32_0 = arith.constant 0 : i32
    %c0_i32_1 = arith.constant 0 : i32
    return %c0_i32, %c0_i32_0 : i32, i32
  }
  func.func @transform_2(%arg0: i32) -> (i32, i32) {
    %c0_i32 = arith.constant 0 : i32
    %c0_i32_0 = arith.constant 0 : i32
    %c0_i32_1 = arith.constant 0 : i32
    return %c0_i32, %c0_i32_0 : i32, i32
  }
  func.func @transform_3(%arg0: i32) -> (i32, i32) {
    %c0_i32 = arith.constant 0 : i32
    %c0_i32_0 = arith.constant 0 : i32
    %c0_i32_1 = arith.constant 0 : i32
    return %c0_i32, %c0_i32_0 : i32, i32
  }
  func.func @transform_4(%arg0: i32) -> (i32, i32) {
    %c0_i32 = arith.constant 0 : i32
    %c0_i32_0 = arith.constant 0 : i32
    %c0_i32_1 = arith.constant 0 : i32
    return %c0_i32, %c0_i32_0 : i32, i32
  }
  func.func @transform_5(%arg0: i32) -> (i32, i32) {
    %c0_i32 = arith.constant 0 : i32
    %c0_i32_0 = arith.constant 0 : i32
    %c0_i32_1 = arith.constant 0 : i32
    return %c0_i32, %c0_i32_0 : i32, i32
  }
  func.func @transform_6(%arg0: i32) -> (i32, i32) {
    %c0_i32 = arith.constant 0 : i32
    %c0_i32_0 = arith.constant 0 : i32
    %c0_i32_1 = arith.constant 0 : i32
    return %c0_i32, %c0_i32_0 : i32, i32
  }
  func.func @transform_7(%arg0: i32) -> (i32, i32) {
    %c0_i32 = arith.constant 0 : i32
    %c0_i32_0 = arith.constant 0 : i32
    return %c0_i32, %arg0 : i32, i32
  }
}

</mosaic_0001>

<bundles_post_ra>
// kernel: tpu_custom_call.1
= control target key start
LH: loop header
LB: loop body
LE: loop exit
PB: predicated region body
PF: predicated region fallthrough
CT: control target
= control target key end

     0   :  { %vm86_vm0 = vcmask 261120   ;;  %v1065_v3 = vmov 0   ;;  %vm336_vm1 = vcmask 523264   ;;  %vm739_vm2 = vcmask 64512   ;;  %s1322_s0 = inlined_call_operand.vmem [shape: f32[32,8], index: 0, kind: input, shape index: {}]   ;;  %s1323_s1 = inlined_call_operand.vmem [shape: f32[64,32], index: 1, kind: input, shape index: {}]   ;;  %s1324_s2 = inlined_call_operand.vmem [shape: f32[64,1], index: 2, kind: input, shape index: {}]   ;;  %s1325_s4 = inlined_call_operand.vmem [shape: f32[128,1], index: 4, kind: input, shape index: {}]   ;;  %s1326_s6 = inlined_call_operand.vmem [shape: f32[32,1], index: 6, kind: input, shape index: {}]   ;;  %s1327_s3 = inlined_call_operand.vmem [shape: f32[128,64], index: 3, kind: input, shape index: {}]   ;;  %s1328_s5 = inlined_call_operand.vmem [shape: f32[32,128], index: 5, kind: input, shape index: {}]   ;;  %s1329_s7 = inlined_call_operand.vmem [shape: f32[32,8], index: 7, kind: output, shape index: {}]  }
   0x1   :  { %v26_v0 = vld [vmem:[%s1322_s0] sm:$0xff]  ;;  %v27_v1 = vld [vmem:[%s1322_s0 + $0x8] sm:$0xff]  ;;  %v28_v2 = vld [vmem:[%s1322_s0 + $0x10] sm:$0xff]  ;;  %999 = vset.pattern.permute.xlu0 %v1065_v3  ;;  %1000 = vset.pattern.permute.xlu1 %v1065_v3 }
   0x2   :  { %v942_v4 = vpack.c.bf16 %v27_v1, %v26_v0  ;;  %v29_v5 = vld [vmem:[%s1322_s0 + $0x18] sm:$0xff]  ;;  %v30_v6 = vld [vmem:[%s1323_s1] sm:$0xff]  ;;  %v40_v9 = vld [vmem:[%s1324_s2 + $0x10] sm:$0xff] }
   0x3   :  { %v946_v7 = vpack.c.bf16 %v29_v5, %v28_v2  ;;  %852 = vmatprep.mubr.msk.f32.mxu0 %vm86_vm0, %v30_v6  ;;  %v38_v8 = vld [vmem:[%s1324_s2] sm:$0xff]  ;;  %58 = vperm.xlu1 %1000, %v40_v9   ;;  %v39_v10 = vld [vmem:[%s1324_s2 + $0x8] sm:$0xff]  ;;  %v41_v11 = vld [vmem:[%s1324_s2 + $0x18] sm:$0xff] }
   0x4   :  { %943 = vmatprep.subr.bf16.mxu0 %v942_v4  ;;  %48 = vperm.xlu0 %999, %v38_v8   ;;  %v31_v12 = vld [vmem:[%s1323_s1 + $0x8] sm:$0xff]  ;;  %v32_v13 = vld [vmem:[%s1323_s1 + $0x10] sm:$0xff]  ;;  %v42_v14 = vld [vmem:[%s1324_s2 + $0x20] sm:$0xff] }
   0x5   :  { %945 = vmatpush3.bf16.msra.mxu0 %v942_v4  ;;  %v43_v15 = vld [vmem:[%s1324_s2 + $0x28] sm:$0xff]  ;;  %v33_v16 = vld [vmem:[%s1323_s1 + $0x18] sm:$0xff]  ;;  %v34_v17 = vld [vmem:[%s1323_s1 + $0x20] sm:$0xff] }
   0x6   :  { %947 = vmatprep.subr.bf16.mxu0 %v946_v7  ;;  %v44_v18 = vld [vmem:[%s1324_s2 + $0x30] sm:$0xff]  ;;  %v45_v19 = vld [vmem:[%s1324_s2 + $0x38] sm:$0xff]  ;;  %v35_v20 = vld [vmem:[%s1323_s1 + $0x28] sm:$0xff] }
   0x7   :  { %63 = vperm.xlu1 %1000, %v41_v11   ;;  %v36_v21 = vld [vmem:[%s1323_s1 + $0x30] sm:$0xff]  ;;  %v240_v22 = vld [vmem:[%s1325_s4] sm:$0xff]  ;;  %v241_v23 = vld [vmem:[%s1325_s4 + $0x8] sm:$0xff] }
   0x8   :  { %53 = vperm.xlu0 %999, %v39_v10   ;;  %v37_v24 = vld [vmem:[%s1323_s1 + $0x38] sm:$0xff]  ;;  %v242_v25 = vld [vmem:[%s1325_s4 + $0x10] sm:$0xff]  ;;  %v244_v27 = vld [vmem:[%s1325_s4 + $0x20] sm:$0xff] }
   0x9   :  { %949 = vmatpush3.bf16.msra.mxu0 %v946_v7  ;;  %v243_v26 = vld [vmem:[%s1325_s4 + $0x18] sm:$0xff]  ;;  %v245_v28 = vld [vmem:[%s1325_s4 + $0x28] sm:$0xff]  ;;  %v246_v29 = vld [vmem:[%s1325_s4 + $0x30] sm:$0xff] }
   0xa   :  { %v247_v30 = vld [vmem:[%s1325_s4 + $0x38] sm:$0xff]  ;;  %v248_v31 = vld [vmem:[%s1325_s4 + $0x40] sm:$0xff]  ;;  %v249_v32 = vld [vmem:[%s1325_s4 + $0x48] sm:$0xff] }
   0xb   :  { %73 = vperm.xlu1 %1000, %v43_v15   ;;  %v250_v33 = vld [vmem:[%s1325_s4 + $0x50] sm:$0xff]  ;;  %v251_v34 = vld [vmem:[%s1325_s4 + $0x58] sm:$0xff]  ;;  %v252_v35 = vld [vmem:[%s1325_s4 + $0x60] sm:$0xff] }
   0xc   :  { %853 = vmatmul.mubr.msk.f32.vlgmr.msra.gmra.mrb[0].mxu0 %vm86_vm0, %v31_v12  ;;  %68 = vperm.xlu0 %999, %v42_v14   ;;  %v253_v36 = vld [vmem:[%s1325_s4 + $0x68] sm:$0xff]  ;;  %v254_v37 = vld [vmem:[%s1325_s4 + $0x70] sm:$0xff]  ;;  %v255_v38 = vld [vmem:[%s1325_s4 + $0x78] sm:$0xff] }
   0xd   :  { %855 = vmatprep.mubr.msk.f32.mxu0 %vm86_vm0, %v32_v13  ;;  %v630_v39 = vld [vmem:[%s1326_s6] sm:$0xff]  ;;  %v631_v40 = vld [vmem:[%s1326_s6 + $0x8] sm:$0xff]  ;;  %v632_v41 = vld [vmem:[%s1326_s6 + $0x10] sm:$0xff] }
   0xe   :  { %v633_v42 = vld [vmem:[%s1326_s6 + $0x18] sm:$0xff]  ;;  %v224_v43 = vld [vmem:[%s1327_s3] sm:$0xff] }
   0xf   :  { %83 = vperm.xlu1 %1000, %v45_v19   ;;  %880 = vmatprep.mubr.msk.f32.mxu1 %vm336_vm1, %v224_v43  ;;  %v228_v19 = vld [vmem:[%s1327_s3 + $0x20] sm:$0xff] }
  0x10   :  { %856 = vmatmul.mubr.msk.f32.gmra.mrb[2].mxu0 %vm86_vm0, %v33_v16  ;;  %78 = vperm.xlu0 %999, %v44_v18   ;;  %v225_v16 = vld [vmem:[%s1327_s3 + $0x8] sm:$0xff]  ;;  %v227_v18 = vld [vmem:[%s1327_s3 + $0x18] sm:$0xff] }
  0x11   :  { %858 = vmatprep.mubr.msk.f32.mxu0 %vm86_vm0, %v34_v17  ;;  %v226_v17 = vld [vmem:[%s1327_s3 + $0x10] sm:$0xff] }
  0x13   :  { %263 = vperm.xlu1 %1000, %v241_v23   ;;  %v232_v23 = vld [vmem:[%s1327_s3 + $0x40] sm:$0xff] }
  0x14   :  { %859 = vmatmul.mubr.msk.f32.gmra.mrb[4].mxu0 %vm86_vm0, %v35_v20  ;;  %258 = vperm.xlu0 %999, %v240_v22   ;;  %v229_v20 = vld [vmem:[%s1327_s3 + $0x28] sm:$0xff]  ;;  %v231_v22 = vld [vmem:[%s1327_s3 + $0x38] sm:$0xff] }
  0x15   :  { %861 = vmatprep.mubr.msk.f32.mxu0 %vm86_vm0, %v36_v21  ;;  %v230_v21 = vld [vmem:[%s1327_s3 + $0x30] sm:$0xff] }
  0x17   :  { %273 = vperm.xlu1 %1000, %v243_v26   ;;  %v235_v26 = vld [vmem:[%s1327_s3 + $0x58] sm:$0xff] }
  0x18   :  { %862 = vmatmul.mubr.msk.f32.gmra.mrb[6].mxu0 %vm86_vm0, %v37_v24  ;;  %268 = vperm.xlu0 %999, %v242_v25   ;;  %v233_v24 = vld [vmem:[%s1327_s3 + $0x48] sm:$0xff]  ;;  %v234_v25 = vld [vmem:[%s1327_s3 + $0x50] sm:$0xff] }
  0x1b   :  { %283 = vperm.xlu1 %1000, %v245_v28   ;;  %v237_v28 = vld [vmem:[%s1327_s3 + $0x68] sm:$0xff] }
  0x1c   :  { %278 = vperm.xlu0 %999, %v244_v27   ;;  %v236_v27 = vld [vmem:[%s1327_s3 + $0x60] sm:$0xff] }
  0x1f   :  { %293 = vperm.xlu1 %1000, %v247_v30   ;;  %v239_v30 = vld [vmem:[%s1327_s3 + $0x78] sm:$0xff] }
  0x20   :  { %288 = vperm.xlu0 %999, %v246_v29   ;;  %v238_v29 = vld [vmem:[%s1327_s3 + $0x70] sm:$0xff] }
  0x23   :  { %303 = vperm.xlu1 %1000, %v249_v32  }
  0x24   :  { %298 = vperm.xlu0 %999, %v248_v31   ;;  %v626_v31 = vld [vmem:[%s1328_s5] sm:$0xff] }
  0x25   :  { %936 = vmatprep.mubr.f32.mxu0 %v626_v31 }
  0x27   :  { %313 = vperm.xlu1 %1000, %v251_v34  }
  0x28   :  { %308 = vperm.xlu0 %999, %v250_v33  }
  0x2b   :  { %323 = vperm.xlu1 %1000, %v253_v36  }
  0x2c   :  { %318 = vperm.xlu0 %999, %v252_v35  }
  0x2f   :  { %333 = vperm.xlu1 %1000, %v255_v38  }
  0x30   :  { %328 = vperm.xlu0 %999, %v254_v37  }
  0x33   :  { %641 = vperm.xlu1 %1000, %v631_v40  }
  0x34   :  { %636 = vperm.xlu0 %999, %v630_v39  }
  0x37   :  { %651 = vperm.xlu1 %1000, %v633_v42  }
  0x38   :  { %646 = vperm.xlu0 %999, %v632_v41  }
  0x82   :  { %v59_v45 = vpop.permute.xlu1 %58 }
  0x83   :  { %v49_v44 = vpop.permute.xlu0 %48 }
  0x86   :  { %v64_v47 = vpop.permute.xlu1 %63 }
  0x87   :  { %v54_v46 = vpop.permute.xlu0 %53 }
  0x8a   :  { %v74_v57 = vpop.permute.xlu1 %73 }
  0x8b   :  { %v69_v60 = vpop.permute.xlu0 %68 }
  0x8e   :  { %v84_v5 = vpop.permute.xlu1 %83 }
  0x8f   :  { %v79_v8 = vpop.permute.xlu0 %78 }
  0x92   :  { %v264_v32 = vpop.permute.xlu1 %263 }
  0x93   :  { %v259_v33 = vpop.permute.xlu0 %258 }
  0x96   :  { %v274_v34 = vpop.permute.xlu1 %273 }
  0x97   :  { %v269_v35 = vpop.permute.xlu0 %268 }
  0x9a   :  { %v284_v36 = vpop.permute.xlu1 %283 }
  0x9b   :  { %v279_v37 = vpop.permute.xlu0 %278 }
  0x9e   :  { %v294_v43 = vpop.permute.xlu1 %293 }
  0xdf   :  { %v854_v48 = vpop.f32.mrb[0].mxu0 }
  0xe0   :  { %v183_v49 = vadd.f32 %v854_v48, %v54_v46  ;;  %v177_v50 = vpop.f32.mrb[1].mxu0  ;;  %v289_v46 = vpop.permute.xlu0 %288 }
  0xe1   :  { %v178_v51 = vadd.f32 %v177_v50, %v49_v44 }
  0xe2   :  { %v217_v52 = vmax.f32 %v183_v49, 0.0 }
  0xe3   :  { %v216_v53 = vmax.f32 %v178_v51, 0.0  ;;  %v857_v54 = vpop.f32.mrb[2].mxu0 }
  0xe4   :  { %v193_v55 = vadd.f32 %v857_v54, %v64_v47  ;;  %v187_v56 = vpop.f32.mrb[3].mxu0 }
  0xe5   :  { %v188_v58 = vadd.f32 %v187_v56, %v59_v45  ;;  %v950_v59 = vpack.c.bf16 %v217_v52, %v216_v53 }
  0xe6   :  { %v219_v61 = vmax.f32 %v193_v55, 0.0  ;;  %v304_v55 = vpop.permute.xlu1 %303 }
  0xe7   :  { %v218_v62 = vmax.f32 %v188_v58, 0.0  ;;  %v860_v63 = vpop.f32.mrb[4].mxu0  ;;  %951 = vmatprep.subr.bf16.mxu1 %v950_v59 }
  0xe8   :  { %v203_v0 = vadd.f32 %v860_v63, %v74_v57  ;;  %v197_v1 = vpop.f32.mrb[5].mxu0  ;;  %953 = vmatpush3.bf16.msra.mxu1 %v950_v59  ;;  %v299_v57 = vpop.permute.xlu0 %298 }
  0xe9   :  { %v954_v2 = vpack.c.bf16 %v219_v61, %v218_v62  ;;  %v198_v3 = vadd.f32 %v197_v1, %v69_v60 }
  0xea   :  { %v221_v4 = vmax.f32 %v203_v0, 0.0 }
  0xeb   :  { %v220_v6 = vmax.f32 %v198_v3, 0.0  ;;  %v863_v7 = vpop.f32.mrb[6].mxu0  ;;  %955 = vmatprep.subr.bf16.mxu1 %v954_v2  ;;  %v314_v3 = vpop.permute.xlu1 %313 }
  0xec   :  { %v213_v9 = vadd.f32 %v863_v7, %v84_v5  ;;  %v207_v10 = vpop.f32.mrb[7].mxu0  ;;  %957 = vmatpush3.bf16.msra.mxu1 %v954_v2  ;;  %v309_v7 = vpop.permute.xlu0 %308 }
  0xed   :  { %v958_v11 = vpack.c.bf16 %v221_v4, %v220_v6  ;;  %v208_v12 = vadd.f32 %v207_v10, %v79_v8 }
  0xee   :  { %v223_v13 = vmax.f32 %v213_v9, 0.0 }
  0xef   :  { %v222_v14 = vmax.f32 %v208_v12, 0.0  ;;  %959 = vmatprep.subr.bf16.mxu1 %v958_v11 }
  0xf0   :  { %961 = vmatpush3.bf16.msra.mxu1 %v958_v11 }
  0xf1   :  { %v962_v15 = vpack.c.bf16 %v223_v13, %v222_v14 }
  0xf3   :  { %963 = vmatprep.subr.bf16.mxu1 %v962_v15 }
  0xf4   :  { %965 = vmatpush3.bf16.msra.mxu1 %v962_v15 }
  0xf7   :  { %881 = vmatmul.mubr.msk.f32.vlgmr.msra.gmra.mrb[0].mxu1 %vm336_vm1, %v225_v16 }
  0xf8   :  { %883 = vmatprep.mubr.msk.f32.mxu1 %vm336_vm1, %v226_v17 }
  0xfb   :  { %884 = vmatmul.mubr.msk.f32.gmra.mrb[2].mxu1 %vm336_vm1, %v227_v18 }
  0xfc   :  { %886 = vmatprep.mubr.msk.f32.mxu1 %vm336_vm1, %v228_v19 }
  0xff   :  { %887 = vmatmul.mubr.msk.f32.gmra.mrb[4].mxu1 %vm336_vm1, %v229_v20 }
 0x100   :  { %889 = vmatprep.mubr.msk.f32.mxu1 %vm336_vm1, %v230_v21  ;;  %v324_v21 = vpop.permute.xlu1 %323 }
 0x103   :  { %890 = vmatmul.mubr.msk.f32.gmra.mrb[6].mxu1 %vm336_vm1, %v231_v22 }
 0x104   :  { %892 = vmatprep.mubr.msk.f32.mxu1 %vm336_vm1, %v232_v23 }
 0x107   :  { %893 = vmatmul.mubr.msk.f32.gmra.mrb[8].mxu1 %vm336_vm1, %v233_v24  ;;  %v319_v24 = vpop.permute.xlu0 %318 }
 0x108   :  { %895 = vmatprep.mubr.msk.f32.mxu1 %vm336_vm1, %v234_v25 }
 0x10b   :  { %896 = vmatmul.mubr.msk.f32.gmra.mrb[10].mxu1 %vm336_vm1, %v235_v26 }
 0x10c   :  { %898 = vmatprep.mubr.msk.f32.mxu1 %vm336_vm1, %v236_v27 }
 0x10f   :  { %899 = vmatmul.mubr.msk.f32.gmra.mrb[12].mxu1 %vm336_vm1, %v237_v28 }
 0x110   :  { %901 = vmatprep.mubr.msk.f32.mxu1 %vm336_vm1, %v238_v29 }
 0x113   :  { %902 = vmatmul.mubr.msk.f32.gmra.mrb[14].mxu1 %vm336_vm1, %v239_v30 }
 0x1ca   :  { %v882_v38 = vpop.f32.mrb[0].mxu1 }
 0x1cb   :  { %v457_v39 = vadd.f32 %v882_v38, %v264_v32  ;;  %v451_v40 = vpop.f32.mrb[1].mxu1 }
 0x1cc   :  { %v452_v41 = vadd.f32 %v451_v40, %v259_v33 }
 0x1cd   :  { %v773_v42 = vmul.f32 -1.442695, %v457_v39 }
 0x1ce   :  { %v772_v44 = vmul.f32 -1.442695, %v452_v41  ;;  %v885_v45 = vpop.f32.mrb[2].mxu1 }
 0x1cf   :  { %1001 = vpow2.f32 %v773_v42  ;;  %v467_v47 = vadd.f32 %v885_v45, %v274_v34  ;;  %v461_v48 = vpop.f32.mrb[3].mxu1  ;;  %v329_v42 = vpop.permute.xlu0 %328 }
 0x1d0   :  { %1003 = vpow2.f32 %v772_v44  ;;  %v462_v49 = vadd.f32 %v461_v48, %v269_v35 }
 0x1d1   :  { %v775_v50 = vmul.f32 -1.442695, %v467_v47 }
 0x1d2   :  { %v774_v51 = vmul.f32 -1.442695, %v462_v49  ;;  %v888_v52 = vpop.f32.mrb[4].mxu1 }
 0x1d3   :  { %1005 = vpow2.f32 %v775_v50  ;;  %v477_v53 = vadd.f32 %v888_v52, %v284_v36  ;;  %v471_v54 = vpop.f32.mrb[5].mxu1 }
 0x1d4   :  { %1007 = vpow2.f32 %v774_v51  ;;  %v472_v56 = vadd.f32 %v471_v54, %v279_v37  ;;  %v334_v37 = vpop.permute.xlu1 %333 }
 0x1d5   :  { %v777_v58 = vmul.f32 -1.442695, %v477_v53 }
 0x1d6   :  { %v776_v59 = vmul.f32 -1.442695, %v472_v56  ;;  %v891_v60 = vpop.f32.mrb[6].mxu1 }
 0x1d7   :  { %1009 = vpow2.f32 %v777_v58  ;;  %v487_v61 = vadd.f32 %v891_v60, %v294_v43  ;;  %v481_v62 = vpop.f32.mrb[7].mxu1 }
 0x1d8   :  { %1011 = vpow2.f32 %v776_v59  ;;  %v482_v63 = vadd.f32 %v481_v62, %v289_v46 }
 0x1d9   :  { %v1002_v0 = vpop.eup %1001  ;;  %v779_v1 = vmul.f32 -1.442695, %v487_v61 }
 0x1da   :  { %v1004_v2 = vpop.eup %1003  ;;  %v579_v4 = vadd.f32 1.0, %v1002_v0  ;;  %v778_v5 = vmul.f32 -1.442695, %v482_v63  ;;  %v894_v6 = vpop.f32.mrb[8].mxu1 }
 0x1db   :  { %v578_v8 = vadd.f32 1.0, %v1004_v2  ;;  %1013 = vpow2.f32 %v779_v1  ;;  %v497_v9 = vadd.f32 %v894_v6, %v304_v55  ;;  %v491_v10 = vpop.f32.mrb[9].mxu1 }
 0x1dc   :  { %1015 = vrcp.f32 %v579_v4  ;;  %v492_v11 = vadd.f32 %v491_v10, %v299_v57 }
 0x1dd   :  { %v1006_v12 = vpop.eup %1005  ;;  %1017 = vrcp.f32 %v578_v8  ;;  %v781_v13 = vmul.f32 -1.442695, %v497_v9 }
 0x1de   :  { %v1008_v14 = vpop.eup %1007  ;;  %v581_v15 = vadd.f32 1.0, %v1006_v12  ;;  %1019 = vpow2.f32 %v778_v5  ;;  %v780_v16 = vmul.f32 -1.442695, %v492_v11  ;;  %v897_v17 = vpop.f32.mrb[10].mxu1 }
 0x1df   :  { %v580_v18 = vadd.f32 1.0, %v1008_v14  ;;  %1021 = vpow2.f32 %v781_v13  ;;  %v507_v19 = vadd.f32 %v897_v17, %v314_v3  ;;  %v501_v20 = vpop.f32.mrb[11].mxu1 }
 0x1e0   :  { %1023 = vrcp.f32 %v581_v15  ;;  %v502_v22 = vadd.f32 %v501_v20, %v309_v7 }
 0x1e1   :  { %v1010_v23 = vpop.eup %1009  ;;  %1025 = vrcp.f32 %v580_v18  ;;  %v783_v25 = vmul.f32 -1.442695, %v507_v19 }
 0x1e2   :  { %v1012_v26 = vpop.eup %1011  ;;  %v583_v27 = vadd.f32 1.0, %v1010_v23  ;;  %1027 = vpow2.f32 %v780_v16  ;;  %v782_v28 = vmul.f32 -1.442695, %v502_v22  ;;  %v900_v29 = vpop.f32.mrb[12].mxu1 }
 0x1e3   :  { %v582_v30 = vadd.f32 1.0, %v1012_v26  ;;  %1029 = vpow2.f32 %v783_v25  ;;  %v517_v31 = vadd.f32 %v900_v29, %v324_v21  ;;  %v511_v32 = vpop.f32.mrb[13].mxu1  ;;  %v628_v25 = vld [vmem:[%s1328_s5 + $0x10] sm:$0xff]  ;;  %v629_v26 = vld [vmem:[%s1328_s5 + $0x18] sm:$0xff] }
 0x1e4   :  { %1031 = vrcp.f32 %v583_v27  ;;  %v512_v33 = vadd.f32 %v511_v32, %v319_v24  ;;  %v627_v24 = vld [vmem:[%s1328_s5 + $0x8] sm:$0xff]  ;;  %v642_v27 = vpop.permute.xlu1 %641 }
 0x1e5   :  { %v1014_v34 = vpop.eup %1013  ;;  %1033 = vrcp.f32 %v582_v30  ;;  %v785_v35 = vmul.f32 -1.442695, %v517_v31 }
 0x1e6   :  { %v1016_v36 = vpop.eup %1015  ;;  %v585_v38 = vadd.f32 1.0, %v1014_v34  ;;  %1035 = vpow2.f32 %v782_v28  ;;  %v784_v39 = vmul.f32 -1.442695, %v512_v33  ;;  %v903_v40 = vpop.f32.mrb[14].mxu1 }
 0x1e7   :  { %v1018_v41 = vpop.eup %1017  ;;  %1037 = vpow2.f32 %v785_v35  ;;  %v527_v43 = vadd.f32 %v903_v40, %v334_v37  ;;  %v521_v44 = vpop.f32.mrb[15].mxu1 }
 0x1e8   :  { %v1020_v45 = vpop.eup %1019  ;;  %1039 = vrcp.f32 %v585_v38  ;;  %v522_v46 = vadd.f32 %v521_v44, %v329_v42  ;;  %v966_v47 = vpack.c.bf16 %v1016_v36, %v1018_v41  ;;  %v637_v28 = vpop.permute.xlu0 %636 }
 0x1e9   :  { %v1022_v48 = vpop.eup %1021  ;;  %v584_v49 = vadd.f32 1.0, %v1020_v45  ;;  %1041 = vpow2.f32 %v784_v39  ;;  %v787_v50 = vmul.f32 -1.442695, %v527_v43  ;;  %v652_v33 = vpop.permute.xlu1 %651 }
 0x1ea   :  { %v1024_v51 = vpop.eup %1023  ;;  %v587_v52 = vadd.f32 1.0, %v1022_v48  ;;  %v786_v53 = vmul.f32 -1.442695, %v522_v46  ;;  %967 = vmatprep.subr.bf16.mxu0 %v966_v47 }
 0x1eb   :  { %v1026_v54 = vpop.eup %1025  ;;  %1043 = vrcp.f32 %v584_v49  ;;  %969 = vmatpush3.bf16.msra.mxu0 %v966_v47 }
 0x1ec   :  { %v1028_v55 = vpop.eup %1027  ;;  %1045 = vrcp.f32 %v587_v52  ;;  %v970_v56 = vpack.c.bf16 %v1024_v51, %v1026_v54  ;;  %v647_v35 = vpop.permute.xlu0 %646 }
 0x1ed   :  { %v1030_v57 = vpop.eup %1029  ;;  %v586_v58 = vadd.f32 1.0, %v1028_v55  ;;  %1047 = vpow2.f32 %v787_v50 }
 0x1ee   :  { %v1032_v59 = vpop.eup %1031  ;;  %v589_v60 = vadd.f32 1.0, %v1030_v57  ;;  %1049 = vpow2.f32 %v786_v53  ;;  %971 = vmatprep.subr.bf16.mxu0 %v970_v56 }
 0x1ef   :  { %v1034_v61 = vpop.eup %1033  ;;  %1051 = vrcp.f32 %v586_v58  ;;  %973 = vmatpush3.bf16.msra.mxu0 %v970_v56 }
 0x1f0   :  { %v1036_v62 = vpop.eup %1035  ;;  %v974_v63 = vpack.c.bf16 %v1032_v59, %v1034_v61  ;;  %1053 = vrcp.f32 %v589_v60 }
 0x1f1   :  { %v1038_v0 = vpop.eup %1037  ;;  %v588_v1 = vadd.f32 1.0, %v1036_v62 }
 0x1f2   :  { %v1040_v2 = vpop.eup %1039  ;;  %v591_v3 = vadd.f32 1.0, %v1038_v0  ;;  %975 = vmatprep.subr.bf16.mxu0 %v974_v63 }
 0x1f3   :  { %v1042_v4 = vpop.eup %1041  ;;  %1055 = vrcp.f32 %v588_v1  ;;  %977 = vmatpush3.bf16.msra.mxu0 %v974_v63 }
 0x1f4   :  { %1057 = vrcp.f32 %v591_v3  ;;  %v590_v5 = vadd.f32 1.0, %v1042_v4 }
 0x1f5   :  { %v1044_v6 = vpop.eup %1043 }
 0x1f6   :  { %v1046_v7 = vpop.eup %1045  ;;  %1059 = vrcp.f32 %v590_v5  ;;  %v978_v8 = vpack.c.bf16 %v1040_v2, %v1044_v6 }
 0x1f7   :  { %v1048_v9 = vpop.eup %1047 }
 0x1f8   :  { %v1050_v10 = vpop.eup %1049  ;;  %v593_v11 = vadd.f32 1.0, %v1048_v9  ;;  %979 = vmatprep.subr.bf16.mxu0 %v978_v8 }
 0x1f9   :  { %v1052_v12 = vpop.eup %1051  ;;  %v592_v13 = vadd.f32 1.0, %v1050_v10  ;;  %981 = vmatpush3.bf16.msra.mxu0 %v978_v8 }
 0x1fa   :  { %1061 = vrcp.f32 %v593_v11  ;;  %v982_v14 = vpack.c.bf16 %v1046_v7, %v1052_v12  ;;  %v1054_v15 = vpop.eup %1053 }
 0x1fb   :  { %1063 = vrcp.f32 %v592_v13 }
 0x1fc   :  { %983 = vmatprep.subr.bf16.mxu0 %v982_v14 }
 0x1fd   :  { %v1056_v16 = vpop.eup %1055  ;;  %985 = vmatpush3.bf16.msra.mxu0 %v982_v14 }
 0x1fe   :  { %v1058_v17 = vpop.eup %1057  ;;  %v986_v18 = vpack.c.bf16 %v1054_v15, %v1056_v16 }
 0x200   :  { %v1060_v19 = vpop.eup %1059  ;;  %987 = vmatprep.subr.bf16.mxu0 %v986_v18 }
 0x201   :  { %989 = vmatpush3.bf16.msra.mxu0 %v986_v18  ;;  %v990_v20 = vpack.c.bf16 %v1058_v17, %v1060_v19 }
 0x203   :  { %991 = vmatprep.subr.bf16.mxu0 %v990_v20 }
 0x204   :  { %v1062_v21 = vpop.eup %1061 }
 0x205   :  { %v1064_v22 = vpop.eup %1063  ;;  %993 = vmatpush3.bf16.msra.mxu0 %v990_v20 }
 0x206   :  { %v994_v23 = vpack.c.bf16 %v1062_v21, %v1064_v22 }
 0x208   :  { %995 = vmatprep.subr.bf16.mxu0 %v994_v23 }
 0x209   :  { %997 = vmatpush3.bf16.msra.mxu0 %v994_v23 }
 0x20c   :  { %937 = vmatmul.mubr.f32.vlgmr.msra.gmra.mrb[8].mxu0 %v627_v24 }
 0x20d   :  { %939 = vmatprep.mubr.f32.mxu0 %v628_v25 }
 0x210   :  { %940 = vmatmul.mubr.f32.gmra.mrb[10].mxu0 %v629_v26 }
 0x2df   :  { %v938_v29 = vpop.f32.mrb[8].mxu0 }
 0x2e0   :  { %v726_v30 = vadd.f32 %v938_v29, %v642_v27  ;;  %v720_v31 = vpop.f32.mrb[9].mxu0 }
 0x2e1   :  { %v721_v32 = vadd.f32 %v720_v31, %v637_v28 }
 0x2e2   :  { %741 = vst.msk [vmem:[%s1329_s7 + $0x8] sm:$0xff] %vm739_vm2, %v726_v30 }
 0x2e3   :  { %740 = vst.msk [vmem:[%s1329_s7] sm:$0xff] %vm739_vm2, %v721_v32  ;;  %v941_v34 = vpop.f32.mrb[10].mxu0 }
 0x2e4   :  { %v736_v36 = vadd.f32 %v941_v34, %v652_v33  ;;  %v730_v37 = vpop.f32.mrb[11].mxu0 }
 0x2e5   :  { %v731_v38 = vadd.f32 %v730_v37, %v647_v35 }
 0x2e6   :  { %743 = vst.msk [vmem:[%s1329_s7 + $0x18] sm:$0xff] %vm739_vm2, %v736_v36 }
 0x2e7   :  { %742 = vst.msk [vmem:[%s1329_s7 + $0x10] sm:$0xff] %vm739_vm2, %v731_v38 }

</bundles_post_ra>
